<compile_context>
chip_gen: v5e
topology: v5e:2x2
jax: 0.10.0
libtpu: 0.0.40
codegen_flags: <defaults>
</compile_context>

<pallas_src>
import functools

import jax
import jax.numpy as jnp
from jax import lax
from jax.experimental import pallas as pl
from jax.experimental.pallas import tpu as pltpu

LANE = 128
SUB = 8


def _round_up(n, m):
    return ((n + m - 1) // m) * m


# -----------------------------------------------------------------------------
# Pallas kernel: one batch tile, whole sequence, all operands VMEM-resident.
# -----------------------------------------------------------------------------
def snr_kernel(x_ref,        # (T*Bt, Din)  time-major rows of this batch tile
               win_ref,      # (Din, H)     input linear weight (transposed)
               wslab_ref,    # (H, WS)      fused weight slab (lane-aligned segments)
               bslab_ref,    # (1, BS)      fused bias row (f32, lane-aligned segments)
               out_ref,      # (Bt, padDout) lane-dense output block
               *, T, Bt, H, pad4H, padDout, padH):
    cdt = wslab_ref.dtype                      # MXU operand dtype (f32 or bf16)

    # Static lane offsets into the fused slabs.
    o_ihf, o_hhf, o_ihb = 0, pad4H, 2 * pad4H
    o_outf, o_outb = 3 * pad4H, 3 * pad4H + padDout
    ob_in, ob_f, ob_b, ob_out = 0, padH, padH + pad4H, padH + 2 * pad4H

    # ---- hoisted batched matmuls (large, MXU-friendly) ----------------------
    # U = tanh(X @ W_in + b_in) over all T*Bt rows at once.
    u = jnp.tanh(
        jnp.dot(x_ref[...], win_ref[...], preferred_element_type=jnp.float32)
        + bslab_ref[:, ob_in:ob_in + H])                      # (T*Bt, H) f32
    u_c = u.astype(cdt)

    w_ihf = wslab_ref[:, o_ihf:o_ihf + 4 * H]                 # (H, 4H)
    w_hhf = wslab_ref[:, o_hhf:o_hhf + 4 * H]                 # (H, 4H)
    # Forward input->gate contribution with the LSTM bias folded in.
    g_in = (jnp.dot(u_c, w_ihf, preferred_element_type=jnp.float32)
            + bslab_ref[:, ob_f:ob_f + 4 * H])                # (T*Bt, 4H) f32

    def activate(gates):
        # One sigmoid + one tanh over the full (Bt, 4H) vreg, then static lane
        # slices per gate (PyTorch gate order: i, f, g, o).
        sig = jax.nn.sigmoid(gates)
        tnh = jnp.tanh(gates)
        return (sig[:, 0 * H:1 * H], sig[:, 1 * H:2 * H],
                tnh[:, 2 * H:3 * H], sig[:, 3 * H:4 * H])

    def step(h, c, g_t):
        gates = g_t + jnp.dot(h.astype(cdt), w_hhf,
                              preferred_element_type=jnp.float32)
        i, f, g, o = activate(gates)
        c = f * c + i * g
        h = o * jnp.tanh(c)
        return h, c

    # ---- forward recurrence --------------------------------------------------
    h = jnp.zeros((Bt, H), jnp.float32)
    c = jnp.zeros((Bt, H), jnp.float32)
    if T <= 32:
        # Fully unrolled: LLO scheduler overlaps adjacent steps' MXU/EUP/VPU work.
        for t in range(T):
            h, c = step(h, c, g_in[t * Bt:(t + 1) * Bt, :])
    else:
        # Bound code size / live ranges when T is large.
        g_in3 = g_in.reshape(T, Bt, 4 * H)

        def body(t, carry):
            hh, cc = carry
            return step(hh, cc,
                        lax.dynamic_index_in_dim(g_in3, t, 0, keepdims=False))

        h, c = lax.fori_loop(0, T, body, (h, c))

    # ---- backward direction at t = T-1: one cell step from the zero state ----
    # h0 = c0 = 0, so the W_hh_b term vanishes and c_b = i*g.
    w_ihb = wslab_ref[:, o_ihb:o_ihb + 4 * H]
    u_last = u_c[(T - 1) * Bt:T * Bt, :]
    gates_b = (jnp.dot(u_last, w_ihb, preferred_element_type=jnp.float32)
               + bslab_ref[:, ob_b:ob_b + 4 * H])
    i, f, g, o = activate(gates_b)
    h_b = o * jnp.tanh(i * g)

    # ---- output linear without concat: two half-dots, lane-dense store -------
    w_outf = wslab_ref[:, o_outf:o_outf + padDout]            # (H, padDout)
    w_outb = wslab_ref[:, o_outb:o_outb + padDout]            # (H, padDout)
    out_ref[...] = (
        jnp.dot(h.astype(cdt), w_outf, preferred_element_type=jnp.float32)
        + jnp.dot(h_b.astype(cdt), w_outb, preferred_element_type=jnp.float32)
        + bslab_ref[:, ob_out:ob_out + padDout])


# -----------------------------------------------------------------------------
# Parameter prep (done once): transposes, bias fusion, slab packing, dtype.
# -----------------------------------------------------------------------------
def prepare_params(params, compute_dtype=jnp.float32):
    H, Din = params["W_in"].shape
    Dout = params["W_out"].shape[0]
    pad4H = _round_up(4 * H, LANE)
    padDout = _round_up(Dout, LANE)
    padH = _round_up(H, LANE)

    def padlane(a, w):          # pad a 2-D block's lane dim to width w
        return jnp.pad(a, ((0, 0), (0, w - a.shape[1])))

    def padvec(v, w):           # pack a 1-D bias into a (1, w) lane-padded row
        v = v.reshape(1, -1)
        return jnp.pad(v, ((0, 0), (0, w - v.shape[1])))

    # Fused weight slab: W_ih_f | W_hh_f | W_ih_b | W_out_f | W_out_b,
    # each segment lane-padded so in-kernel slices start at 128-lane offsets.
    wslab = jnp.concatenate([
        padlane(params["W_ih_f"].T, pad4H),
        padlane(params["W_hh_f"].T, pad4H),
        padlane(params["W_ih_b"].T, pad4H),
        padlane(params["W_out"][:, :H].T, padDout),
        padlane(params["W_out"][:, H:].T, padDout),
    ], axis=1).astype(compute_dtype)                          # (H, 3*pad4H + 2*padDout)

    # Fused bias row (kept f32: it is added to f32 accumulators).
    bslab = jnp.concatenate([
        padvec(params["b_in"], padH),
        padvec(params["b_ih_f"] + params["b_hh_f"], pad4H),
        padvec(params["b_ih_b"] + params["b_hh_b"], pad4H),
        padvec(params["b_out"], padDout),
    ], axis=1).astype(jnp.float32)                            # (1, padH + 2*pad4H + padDout)

    return {
        "win": params["W_in"].T.astype(compute_dtype),        # (Din, H)
        "wslab": wslab,
        "bslab": bslab,
        "H": H, "Din": Din, "Dout": Dout,
        "pad4H": pad4H, "padDout": padDout, "padH": padH,
    }


# -----------------------------------------------------------------------------
# Wrapper: batch pad + tile, single pallas_call with a "parallel" batch grid.
# -----------------------------------------------------------------------------
def snr_model_forward(x, prep, *, batch_tile=256):
    """x: (B, T, input_dim) float32 -> (B, output_dim) float32."""
    B, T, Din = x.shape
    H, Dout = prep["H"], prep["Dout"]
    pad4H, padDout, padH = prep["pad4H"], prep["padDout"], prep["padH"]
    cdt = prep["wslab"].dtype

    # Batch tile: up to MXU height (256 on v6e/v7x), always a sublane multiple.
    batch_tile = _round_up(batch_tile, SUB)
    Bt = min(_round_up(B, SUB), batch_tile)
    n_tiles = pl.cdiv(B, Bt)
    Bp = Bt * n_tiles

    # Layout plumbing (jitted with the call): pad batch, time-major rows per tile.
    if Bp != B:
        x = jnp.pad(x, ((0, Bp - B), (0, 0), (0, 0)))
    x_tiles = (x.reshape(n_tiles, Bt, T, Din)
                 .transpose(0, 2, 1, 3)                       # (tiles, T, Bt, Din)
                 .reshape(n_tiles, T * Bt, Din)
                 .astype(cdt))

    kernel = functools.partial(snr_kernel, T=T, Bt=Bt, H=H,
                               pad4H=pad4H, padDout=padDout, padH=padH)

    # Rough resident-VMEM estimate (x tile + u + u_c + g_in + weights + out) with
    # headroom; explicit limit so large T*B doesn't trip the 16 MiB v5e default.
    isz = jnp.dtype(cdt).itemsize
    est = (T * Bt * Din * isz                 # x tile
           + T * Bt * H * (4 + isz)           # u (f32) + u_c (cdt)
           + T * Bt * 4 * H * 4               # g_in (f32)
           + prep["wslab"].size * isz
           + prep["win"].size * isz
           + prep["bslab"].size * 4
           + Bt * padDout * 4)                # out tile
    vmem_limit = int(min(max(2 * est, 8 << 20), 100 << 20))

    out = pl.pallas_call(
        kernel,
        out_shape=jax.ShapeDtypeStruct((Bp, padDout), jnp.float32),
        grid=(n_tiles,),
        in_specs=[
            pl.BlockSpec((None, T * Bt, Din), lambda i: (i, 0, 0)),   # per-tile x
            pl.BlockSpec((Din, H), lambda i: (0, 0)),                 # W_in (shared)
            pl.BlockSpec(prep["wslab"].shape, lambda i: (0, 0)),      # weight slab
            pl.BlockSpec(prep["bslab"].shape, lambda i: (0, 0)),      # bias slab
        ],
        out_specs=pl.BlockSpec((Bt, padDout), lambda i: (i, 0)),
        compiler_params=pltpu.CompilerParams(
            dimension_semantics=("parallel",),    # v7x: 2nd TC once >=2 batch tiles
            vmem_limit_bytes=vmem_limit),
    )(x_tiles, prep["win"], prep["wslab"], prep["bslab"])

    return out[:B, :Dout]


# -----------------------------------------------------------------------------
# Pure-JAX reference (full bidirectional LSTM) for correctness checking.
# -----------------------------------------------------------------------------
def ref_forward(x, p):
    u = jnp.tanh(x @ p["W_in"].T + p["b_in"])                 # (B, T, H)
    B, T, _ = x.shape
    H = p["W_in"].shape[0]

    def cell(u_t, h, c, wih, whh, b):
        g = u_t @ wih.T + h @ whh.T + b
        i, f, gg, o = jnp.split(g, 4, axis=-1)
        c = jax.nn.sigmoid(f) * c + jax.nn.sigmoid(i) * jnp.tanh(gg)
        h = jax.nn.sigmoid(o) * jnp.tanh(c)
        return h, c

    h = jnp.zeros((B, H)); c = jnp.zeros((B, H))
    for t in range(T):
        h, c = cell(u[:, t], h, c, p["W_ih_f"], p["W_hh_f"],
                    p["b_ih_f"] + p["b_hh_f"])
    fwd_last = h

    h = jnp.zeros((B, H)); c = jnp.zeros((B, H))
    bwd = [None] * T
    for t in range(T - 1, -1, -1):
        h, c = cell(u[:, t], h, c, p["W_ih_b"], p["W_hh_b"],
                    p["b_ih_b"] + p["b_hh_b"])
        bwd[t] = h

    feat = jnp.concatenate([fwd_last, bwd[-1]], axis=-1)
    return feat @ p["W_out"].T + p["b_out"]


def init_params(key, input_dim, hidden_dim, output_dim):
    ks = jax.random.split(key, 12)
    s = 0.1
    H, D, O = hidden_dim, input_dim, output_dim
    return {
        "W_in":   s * jax.random.normal(ks[0], (H, D), jnp.float32),
        "b_in":   s * jax.random.normal(ks[1], (H,), jnp.float32),
        "W_ih_f": s * jax.random.normal(ks[2], (4 * H, H), jnp.float32),
        "W_hh_f": s * jax.random.normal(ks[3], (4 * H, H), jnp.float32),
        "b_ih_f": s * jax.random.normal(ks[4], (4 * H,), jnp.float32),
        "b_hh_f": s * jax.random.normal(ks[5], (4 * H,), jnp.float32),
        "W_ih_b": s * jax.random.normal(ks[6], (4 * H, H), jnp.float32),
        "W_hh_b": s * jax.random.normal(ks[7], (4 * H, H), jnp.float32),
        "b_ih_b": s * jax.random.normal(ks[8], (4 * H,), jnp.float32),
        "b_hh_b": s * jax.random.normal(ks[9], (4 * H,), jnp.float32),
        "W_out":  s * jax.random.normal(ks[10], (O, 2 * H), jnp.float32),
        "b_out":  s * jax.random.normal(ks[11], (O,), jnp.float32),
    }


if __name__ == "__main__":
    # Small shapes consistent with the module: batch=4, seq=8, input_dim=16,
    # hidden_dim=32, output_dim=4, num_layers=1 (the only valid configuration).
    B, T, INPUT_DIM, HIDDEN_DIM, OUTPUT_DIM = 4, 8, 16, 32, 4

    key = jax.random.PRNGKey(0)
    k_x, k_p = jax.random.split(key)
    x = jax.random.normal(k_x, (B, T, INPUT_DIM), jnp.float32)
    params = init_params(k_p, INPUT_DIM, HIDDEN_DIM, OUTPUT_DIM)

    with jax.default_matmul_precision("highest"):
        ref = ref_forward(x, params)

    # f32-operand path (default).
    prep32 = prepare_params(params, jnp.float32)
    fwd32 = jax.jit(lambda xx: snr_model_forward(xx, prep32))
    out32 = jax.block_until_ready(fwd32(x))
    assert out32.shape == (B, OUTPUT_DIM)
    err32 = float(jnp.max(jnp.abs(out32 - ref)))
    assert jnp.allclose(out32, ref, atol=2e-4, rtol=2e-4), f"f32 mismatch: {err32}"

    # bf16-operand path (MXU lever for larger shapes); accumulation stays f32.
    prep16 = prepare_params(params, jnp.bfloat16)
    fwd16 = jax.jit(lambda xx: snr_model_forward(xx, prep16))
    out16 = jax.block_until_ready(fwd16(x))
    err16 = float(jnp.max(jnp.abs(out16 - ref)))
    assert jnp.allclose(out16, ref, atol=1e-1, rtol=1e-1), f"bf16 mismatch: {err16}"

    print("KERNEL_OK")
</pallas_src>

<mosaic_0001>
module attributes {stable_mosaic.version = 11 : i64} {
  func.func @snr_kernel(%arg0: i32, %arg1: memref<1x64x16xf32, #tpu.memory_space<vmem>>, %arg2: memref<16x32xf32, #tpu.memory_space<vmem>>, %arg3: memref<32x640xf32, #tpu.memory_space<vmem>>, %arg4: memref<1x512xf32, #tpu.memory_space<vmem>>, %arg5: memref<8x128xf32, #tpu.memory_space<vmem>>) attributes {dimension_semantics = [#tpu.dimension_semantics<parallel>], iteration_bounds = array<i64: 1>, scalar_prefetch = 0 : i64, scratch_operands = 0 : i64, tpu.core_type = #tpu.core_type<tc>, window_params = [{transform_indices = @transform_0, window_bounds = array<i64: 1, 64, 16>}, {pipeline_mode = #tpu.pipeline_mode<synchronous>, transform_indices = @transform_1, window_bounds = array<i64: 16, 32>}, {pipeline_mode = #tpu.pipeline_mode<synchronous>, transform_indices = @transform_2, window_bounds = array<i64: 32, 640>}, {pipeline_mode = #tpu.pipeline_mode<synchronous>, transform_indices = @transform_3, window_bounds = array<i64: 1, 512>}, {transform_indices = @transform_4, window_bounds = array<i64: 8, 128>}]} {
    %c0 = arith.constant 0 : index
    %c0_0 = arith.constant 0 : index
    %c0_1 = arith.constant 0 : index
    %0 = vector.load %arg1[%c0, %c0_0, %c0_1] : memref<1x64x16xf32, #tpu.memory_space<vmem>>, vector<1x64x16xf32>
    %1 = vector.shape_cast %0 : vector<1x64x16xf32> to vector<64x16xf32>
    %c0_2 = arith.constant 0 : index
    %c0_3 = arith.constant 0 : index
    %2 = vector.load %arg2[%c0_2, %c0_3] : memref<16x32xf32, #tpu.memory_space<vmem>>, vector<16x32xf32>
    %cst = arith.constant dense<0.000000e+00> : vector<64x32xf32>
    %3 = tpu.matmul %1, %2, %cst {dimension_numbers = #tpu.dot_dimension_numbers<[1], [0], [0], [1], [0, 0, 1, 1], [], []>} : vector<64x16xf32>, vector<16x32xf32>, vector<64x32xf32> -> vector<64x32xf32>
    %c0_4 = arith.constant 0 : index
    %c0_5 = arith.constant 0 : index
    %4 = vector.load %arg4[%c0_4, %c0_5] : memref<1x512xf32, #tpu.memory_space<vmem>>, vector<1x32xf32>
    %5 = vector.broadcast %4 : vector<1x32xf32> to vector<64x32xf32>
    %6 = arith.addf %3, %5 : vector<64x32xf32>
    %7 = math.tanh %6 : vector<64x32xf32>
    %c0_6 = arith.constant 0 : index
    %c0_7 = arith.constant 0 : index
    %8 = vector.load %arg3[%c0_6, %c0_7] : memref<32x640xf32, #tpu.memory_space<vmem>>, vector<32x128xf32>
    %c0_8 = arith.constant 0 : index
    %c128 = arith.constant 128 : index
    %9 = vector.load %arg3[%c0_8, %c128] : memref<32x640xf32, #tpu.memory_space<vmem>>, vector<32x128xf32>
    %cst_9 = arith.constant dense<0.000000e+00> : vector<64x128xf32>
    %10 = tpu.matmul %7, %8, %cst_9 {dimension_numbers = #tpu.dot_dimension_numbers<[1], [0], [0], [1], [0, 0, 1, 1], [], []>} : vector<64x32xf32>, vector<32x128xf32>, vector<64x128xf32> -> vector<64x128xf32>
    %c0_10 = arith.constant 0 : index
    %c128_11 = arith.constant 128 : index
    %11 = vector.load %arg4[%c0_10, %c128_11] : memref<1x512xf32, #tpu.memory_space<vmem>>, vector<1x128xf32>
    %12 = vector.broadcast %11 : vector<1x128xf32> to vector<64x128xf32>
    %13 = arith.addf %10, %12 : vector<64x128xf32>
    %cst_12 = arith.constant 0.000000e+00 : f32
    %14 = vector.broadcast %cst_12 : f32 to vector<8x32xf32>
    %cst_13 = arith.constant 0.000000e+00 : f32
    %15 = vector.broadcast %cst_13 : f32 to vector<8x32xf32>
    %16 = vector.extract_strided_slice %13 {offsets = [0, 0], sizes = [8, 128], strides = [1, 1]} : vector<64x128xf32> to vector<8x128xf32>
    %cst_14 = arith.constant dense<0.000000e+00> : vector<8x128xf32>
    %17 = tpu.matmul %14, %9, %cst_14 {dimension_numbers = #tpu.dot_dimension_numbers<[1], [0], [0], [1], [0, 0, 1, 1], [], []>} : vector<8x32xf32>, vector<32x128xf32>, vector<8x128xf32> -> vector<8x128xf32>
    %18 = arith.addf %16, %17 : vector<8x128xf32>
    %19 = arith.negf %18 : vector<8x128xf32>
    %20 = math.exp %19 : vector<8x128xf32>
    %cst_15 = arith.constant 1.000000e+00 : f32
    %21 = vector.broadcast %cst_15 : f32 to vector<8x128xf32>
    %22 = arith.addf %21, %20 : vector<8x128xf32>
    %23 = arith.divf %21, %22 : vector<8x128xf32>
    %24 = math.tanh %18 : vector<8x128xf32>
    %25 = vector.extract_strided_slice %23 {offsets = [0, 0], sizes = [8, 32], strides = [1, 1]} : vector<8x128xf32> to vector<8x32xf32>
    %26 = vector.extract_strided_slice %23 {offsets = [0, 32], sizes = [8, 32], strides = [1, 1]} : vector<8x128xf32> to vector<8x32xf32>
    %27 = vector.extract_strided_slice %24 {offsets = [0, 64], sizes = [8, 32], strides = [1, 1]} : vector<8x128xf32> to vector<8x32xf32>
    %28 = vector.extract_strided_slice %23 {offsets = [0, 96], sizes = [8, 32], strides = [1, 1]} : vector<8x128xf32> to vector<8x32xf32>
    %29 = arith.mulf %26, %15 : vector<8x32xf32>
    %30 = arith.mulf %25, %27 : vector<8x32xf32>
    %31 = arith.addf %29, %30 : vector<8x32xf32>
    %32 = math.tanh %31 : vector<8x32xf32>
    %33 = arith.mulf %28, %32 : vector<8x32xf32>
    %34 = vector.extract_strided_slice %13 {offsets = [8, 0], sizes = [8, 128], strides = [1, 1]} : vector<64x128xf32> to vector<8x128xf32>
    %cst_16 = arith.constant dense<0.000000e+00> : vector<8x128xf32>
    %35 = tpu.matmul %33, %9, %cst_16 {dimension_numbers = #tpu.dot_dimension_numbers<[1], [0], [0], [1], [0, 0, 1, 1], [], []>} : vector<8x32xf32>, vector<32x128xf32>, vector<8x128xf32> -> vector<8x128xf32>
    %36 = arith.addf %34, %35 : vector<8x128xf32>
    %37 = arith.negf %36 : vector<8x128xf32>
    %38 = math.exp %37 : vector<8x128xf32>
    %cst_17 = arith.constant 1.000000e+00 : f32
    %39 = vector.broadcast %cst_17 : f32 to vector<8x128xf32>
    %40 = arith.addf %39, %38 : vector<8x128xf32>
    %41 = arith.divf %39, %40 : vector<8x128xf32>
    %42 = math.tanh %36 : vector<8x128xf32>
    %43 = vector.extract_strided_slice %41 {offsets = [0, 0], sizes = [8, 32], strides = [1, 1]} : vector<8x128xf32> to vector<8x32xf32>
    %44 = vector.extract_strided_slice %41 {offsets = [0, 32], sizes = [8, 32], strides = [1, 1]} : vector<8x128xf32> to vector<8x32xf32>
    %45 = vector.extract_strided_slice %42 {offsets = [0, 64], sizes = [8, 32], strides = [1, 1]} : vector<8x128xf32> to vector<8x32xf32>
    %46 = vector.extract_strided_slice %41 {offsets = [0, 96], sizes = [8, 32], strides = [1, 1]} : vector<8x128xf32> to vector<8x32xf32>
    %47 = arith.mulf %44, %31 : vector<8x32xf32>
    %48 = arith.mulf %43, %45 : vector<8x32xf32>
    %49 = arith.addf %47, %48 : vector<8x32xf32>
    %50 = math.tanh %49 : vector<8x32xf32>
    %51 = arith.mulf %46, %50 : vector<8x32xf32>
    %52 = vector.extract_strided_slice %13 {offsets = [16, 0], sizes = [8, 128], strides = [1, 1]} : vector<64x128xf32> to vector<8x128xf32>
    %cst_18 = arith.constant dense<0.000000e+00> : vector<8x128xf32>
    %53 = tpu.matmul %51, %9, %cst_18 {dimension_numbers = #tpu.dot_dimension_numbers<[1], [0], [0], [1], [0, 0, 1, 1], [], []>} : vector<8x32xf32>, vector<32x128xf32>, vector<8x128xf32> -> vector<8x128xf32>
    %54 = arith.addf %52, %53 : vector<8x128xf32>
    %55 = arith.negf %54 : vector<8x128xf32>
    %56 = math.exp %55 : vector<8x128xf32>
    %cst_19 = arith.constant 1.000000e+00 : f32
    %57 = vector.broadcast %cst_19 : f32 to vector<8x128xf32>
    %58 = arith.addf %57, %56 : vector<8x128xf32>
    %59 = arith.divf %57, %58 : vector<8x128xf32>
    %60 = math.tanh %54 : vector<8x128xf32>
    %61 = vector.extract_strided_slice %59 {offsets = [0, 0], sizes = [8, 32], strides = [1, 1]} : vector<8x128xf32> to vector<8x32xf32>
    %62 = vector.extract_strided_slice %59 {offsets = [0, 32], sizes = [8, 32], strides = [1, 1]} : vector<8x128xf32> to vector<8x32xf32>
    %63 = vector.extract_strided_slice %60 {offsets = [0, 64], sizes = [8, 32], strides = [1, 1]} : vector<8x128xf32> to vector<8x32xf32>
    %64 = vector.extract_strided_slice %59 {offsets = [0, 96], sizes = [8, 32], strides = [1, 1]} : vector<8x128xf32> to vector<8x32xf32>
    %65 = arith.mulf %62, %49 : vector<8x32xf32>
    %66 = arith.mulf %61, %63 : vector<8x32xf32>
    %67 = arith.addf %65, %66 : vector<8x32xf32>
    %68 = math.tanh %67 : vector<8x32xf32>
    %69 = arith.mulf %64, %68 : vector<8x32xf32>
    %70 = vector.extract_strided_slice %13 {offsets = [24, 0], sizes = [8, 128], strides = [1, 1]} : vector<64x128xf32> to vector<8x128xf32>
    %cst_20 = arith.constant dense<0.000000e+00> : vector<8x128xf32>
    %71 = tpu.matmul %69, %9, %cst_20 {dimension_numbers = #tpu.dot_dimension_numbers<[1], [0], [0], [1], [0, 0, 1, 1], [], []>} : vector<8x32xf32>, vector<32x128xf32>, vector<8x128xf32> -> vector<8x128xf32>
    %72 = arith.addf %70, %71 : vector<8x128xf32>
    %73 = arith.negf %72 : vector<8x128xf32>
    %74 = math.exp %73 : vector<8x128xf32>
    %cst_21 = arith.constant 1.000000e+00 : f32
    %75 = vector.broadcast %cst_21 : f32 to vector<8x128xf32>
    %76 = arith.addf %75, %74 : vector<8x128xf32>
    %77 = arith.divf %75, %76 : vector<8x128xf32>
    %78 = math.tanh %72 : vector<8x128xf32>
    %79 = vector.extract_strided_slice %77 {offsets = [0, 0], sizes = [8, 32], strides = [1, 1]} : vector<8x128xf32> to vector<8x32xf32>
    %80 = vector.extract_strided_slice %77 {offsets = [0, 32], sizes = [8, 32], strides = [1, 1]} : vector<8x128xf32> to vector<8x32xf32>
    %81 = vector.extract_strided_slice %78 {offsets = [0, 64], sizes = [8, 32], strides = [1, 1]} : vector<8x128xf32> to vector<8x32xf32>
    %82 = vector.extract_strided_slice %77 {offsets = [0, 96], sizes = [8, 32], strides = [1, 1]} : vector<8x128xf32> to vector<8x32xf32>
    %83 = arith.mulf %80, %67 : vector<8x32xf32>
    %84 = arith.mulf %79, %81 : vector<8x32xf32>
    %85 = arith.addf %83, %84 : vector<8x32xf32>
    %86 = math.tanh %85 : vector<8x32xf32>
    %87 = arith.mulf %82, %86 : vector<8x32xf32>
    %88 = vector.extract_strided_slice %13 {offsets = [32, 0], sizes = [8, 128], strides = [1, 1]} : vector<64x128xf32> to vector<8x128xf32>
    %cst_22 = arith.constant dense<0.000000e+00> : vector<8x128xf32>
    %89 = tpu.matmul %87, %9, %cst_22 {dimension_numbers = #tpu.dot_dimension_numbers<[1], [0], [0], [1], [0, 0, 1, 1], [], []>} : vector<8x32xf32>, vector<32x128xf32>, vector<8x128xf32> -> vector<8x128xf32>
    %90 = arith.addf %88, %89 : vector<8x128xf32>
    %91 = arith.negf %90 : vector<8x128xf32>
    %92 = math.exp %91 : vector<8x128xf32>
    %cst_23 = arith.constant 1.000000e+00 : f32
    %93 = vector.broadcast %cst_23 : f32 to vector<8x128xf32>
    %94 = arith.addf %93, %92 : vector<8x128xf32>
    %95 = arith.divf %93, %94 : vector<8x128xf32>
    %96 = math.tanh %90 : vector<8x128xf32>
    %97 = vector.extract_strided_slice %95 {offsets = [0, 0], sizes = [8, 32], strides = [1, 1]} : vector<8x128xf32> to vector<8x32xf32>
    %98 = vector.extract_strided_slice %95 {offsets = [0, 32], sizes = [8, 32], strides = [1, 1]} : vector<8x128xf32> to vector<8x32xf32>
    %99 = vector.extract_strided_slice %96 {offsets = [0, 64], sizes = [8, 32], strides = [1, 1]} : vector<8x128xf32> to vector<8x32xf32>
    %100 = vector.extract_strided_slice %95 {offsets = [0, 96], sizes = [8, 32], strides = [1, 1]} : vector<8x128xf32> to vector<8x32xf32>
    %101 = arith.mulf %98, %85 : vector<8x32xf32>
    %102 = arith.mulf %97, %99 : vector<8x32xf32>
    %103 = arith.addf %101, %102 : vector<8x32xf32>
    %104 = math.tanh %103 : vector<8x32xf32>
    %105 = arith.mulf %100, %104 : vector<8x32xf32>
    %106 = vector.extract_strided_slice %13 {offsets = [40, 0], sizes = [8, 128], strides = [1, 1]} : vector<64x128xf32> to vector<8x128xf32>
    %cst_24 = arith.constant dense<0.000000e+00> : vector<8x128xf32>
    %107 = tpu.matmul %105, %9, %cst_24 {dimension_numbers = #tpu.dot_dimension_numbers<[1], [0], [0], [1], [0, 0, 1, 1], [], []>} : vector<8x32xf32>, vector<32x128xf32>, vector<8x128xf32> -> vector<8x128xf32>
    %108 = arith.addf %106, %107 : vector<8x128xf32>
    %109 = arith.negf %108 : vector<8x128xf32>
    %110 = math.exp %109 : vector<8x128xf32>
    %cst_25 = arith.constant 1.000000e+00 : f32
    %111 = vector.broadcast %cst_25 : f32 to vector<8x128xf32>
    %112 = arith.addf %111, %110 : vector<8x128xf32>
    %113 = arith.divf %111, %112 : vector<8x128xf32>
    %114 = math.tanh %108 : vector<8x128xf32>
    %115 = vector.extract_strided_slice %113 {offsets = [0, 0], sizes = [8, 32], strides = [1, 1]} : vector<8x128xf32> to vector<8x32xf32>
    %116 = vector.extract_strided_slice %113 {offsets = [0, 32], sizes = [8, 32], strides = [1, 1]} : vector<8x128xf32> to vector<8x32xf32>
    %117 = vector.extract_strided_slice %114 {offsets = [0, 64], sizes = [8, 32], strides = [1, 1]} : vector<8x128xf32> to vector<8x32xf32>
    %118 = vector.extract_strided_slice %113 {offsets = [0, 96], sizes = [8, 32], strides = [1, 1]} : vector<8x128xf32> to vector<8x32xf32>
    %119 = arith.mulf %116, %103 : vector<8x32xf32>
    %120 = arith.mulf %115, %117 : vector<8x32xf32>
    %121 = arith.addf %119, %120 : vector<8x32xf32>
    %122 = math.tanh %121 : vector<8x32xf32>
    %123 = arith.mulf %118, %122 : vector<8x32xf32>
    %124 = vector.extract_strided_slice %13 {offsets = [48, 0], sizes = [8, 128], strides = [1, 1]} : vector<64x128xf32> to vector<8x128xf32>
    %cst_26 = arith.constant dense<0.000000e+00> : vector<8x128xf32>
    %125 = tpu.matmul %123, %9, %cst_26 {dimension_numbers = #tpu.dot_dimension_numbers<[1], [0], [0], [1], [0, 0, 1, 1], [], []>} : vector<8x32xf32>, vector<32x128xf32>, vector<8x128xf32> -> vector<8x128xf32>
    %126 = arith.addf %124, %125 : vector<8x128xf32>
    %127 = arith.negf %126 : vector<8x128xf32>
    %128 = math.exp %127 : vector<8x128xf32>
    %cst_27 = arith.constant 1.000000e+00 : f32
    %129 = vector.broadcast %cst_27 : f32 to vector<8x128xf32>
    %130 = arith.addf %129, %128 : vector<8x128xf32>
    %131 = arith.divf %129, %130 : vector<8x128xf32>
    %132 = math.tanh %126 : vector<8x128xf32>
    %133 = vector.extract_strided_slice %131 {offsets = [0, 0], sizes = [8, 32], strides = [1, 1]} : vector<8x128xf32> to vector<8x32xf32>
    %134 = vector.extract_strided_slice %131 {offsets = [0, 32], sizes = [8, 32], strides = [1, 1]} : vector<8x128xf32> to vector<8x32xf32>
    %135 = vector.extract_strided_slice %132 {offsets = [0, 64], sizes = [8, 32], strides = [1, 1]} : vector<8x128xf32> to vector<8x32xf32>
    %136 = vector.extract_strided_slice %131 {offsets = [0, 96], sizes = [8, 32], strides = [1, 1]} : vector<8x128xf32> to vector<8x32xf32>
    %137 = arith.mulf %134, %121 : vector<8x32xf32>
    %138 = arith.mulf %133, %135 : vector<8x32xf32>
    %139 = arith.addf %137, %138 : vector<8x32xf32>
    %140 = math.tanh %139 : vector<8x32xf32>
    %141 = arith.mulf %136, %140 : vector<8x32xf32>
    %142 = vector.extract_strided_slice %13 {offsets = [56, 0], sizes = [8, 128], strides = [1, 1]} : vector<64x128xf32> to vector<8x128xf32>
    %cst_28 = arith.constant dense<0.000000e+00> : vector<8x128xf32>
    %143 = tpu.matmul %141, %9, %cst_28 {dimension_numbers = #tpu.dot_dimension_numbers<[1], [0], [0], [1], [0, 0, 1, 1], [], []>} : vector<8x32xf32>, vector<32x128xf32>, vector<8x128xf32> -> vector<8x128xf32>
    %144 = arith.addf %142, %143 : vector<8x128xf32>
    %145 = arith.negf %144 : vector<8x128xf32>
    %146 = math.exp %145 : vector<8x128xf32>
    %cst_29 = arith.constant 1.000000e+00 : f32
    %147 = vector.broadcast %cst_29 : f32 to vector<8x128xf32>
    %148 = arith.addf %147, %146 : vector<8x128xf32>
    %149 = arith.divf %147, %148 : vector<8x128xf32>
    %150 = math.tanh %144 : vector<8x128xf32>
    %151 = vector.extract_strided_slice %149 {offsets = [0, 0], sizes = [8, 32], strides = [1, 1]} : vector<8x128xf32> to vector<8x32xf32>
    %152 = vector.extract_strided_slice %149 {offsets = [0, 32], sizes = [8, 32], strides = [1, 1]} : vector<8x128xf32> to vector<8x32xf32>
    %153 = vector.extract_strided_slice %150 {offsets = [0, 64], sizes = [8, 32], strides = [1, 1]} : vector<8x128xf32> to vector<8x32xf32>
    %154 = vector.extract_strided_slice %149 {offsets = [0, 96], sizes = [8, 32], strides = [1, 1]} : vector<8x128xf32> to vector<8x32xf32>
    %155 = arith.mulf %152, %139 : vector<8x32xf32>
    %156 = arith.mulf %151, %153 : vector<8x32xf32>
    %157 = arith.addf %155, %156 : vector<8x32xf32>
    %158 = math.tanh %157 : vector<8x32xf32>
    %159 = arith.mulf %154, %158 : vector<8x32xf32>
    %c0_30 = arith.constant 0 : index
    %c256 = arith.constant 256 : index
    %160 = vector.load %arg3[%c0_30, %c256] : memref<32x640xf32, #tpu.memory_space<vmem>>, vector<32x128xf32>
    %161 = vector.extract_strided_slice %7 {offsets = [56, 0], sizes = [8, 32], strides = [1, 1]} : vector<64x32xf32> to vector<8x32xf32>
    %cst_31 = arith.constant dense<0.000000e+00> : vector<8x128xf32>
    %162 = tpu.matmul %161, %160, %cst_31 {dimension_numbers = #tpu.dot_dimension_numbers<[1], [0], [0], [1], [0, 0, 1, 1], [], []>} : vector<8x32xf32>, vector<32x128xf32>, vector<8x128xf32> -> vector<8x128xf32>
    %c0_32 = arith.constant 0 : index
    %c256_33 = arith.constant 256 : index
    %163 = vector.load %arg4[%c0_32, %c256_33] : memref<1x512xf32, #tpu.memory_space<vmem>>, vector<1x128xf32>
    %164 = vector.broadcast %163 : vector<1x128xf32> to vector<8x128xf32>
    %165 = arith.addf %162, %164 : vector<8x128xf32>
    %166 = arith.negf %165 : vector<8x128xf32>
    %167 = math.exp %166 : vector<8x128xf32>
    %cst_34 = arith.constant 1.000000e+00 : f32
    %168 = vector.broadcast %cst_34 : f32 to vector<8x128xf32>
    %169 = arith.addf %168, %167 : vector<8x128xf32>
    %170 = arith.divf %168, %169 : vector<8x128xf32>
    %171 = math.tanh %165 : vector<8x128xf32>
    %172 = vector.extract_strided_slice %170 {offsets = [0, 0], sizes = [8, 32], strides = [1, 1]} : vector<8x128xf32> to vector<8x32xf32>
    %173 = vector.extract_strided_slice %171 {offsets = [0, 64], sizes = [8, 32], strides = [1, 1]} : vector<8x128xf32> to vector<8x32xf32>
    %174 = vector.extract_strided_slice %170 {offsets = [0, 96], sizes = [8, 32], strides = [1, 1]} : vector<8x128xf32> to vector<8x32xf32>
    %175 = arith.mulf %172, %173 : vector<8x32xf32>
    %176 = math.tanh %175 : vector<8x32xf32>
    %177 = arith.mulf %174, %176 : vector<8x32xf32>
    %c0_35 = arith.constant 0 : index
    %c384 = arith.constant 384 : index
    %178 = vector.load %arg3[%c0_35, %c384] : memref<32x640xf32, #tpu.memory_space<vmem>>, vector<32x128xf32>
    %c0_36 = arith.constant 0 : index
    %c512 = arith.constant 512 : index
    %179 = vector.load %arg3[%c0_36, %c512] : memref<32x640xf32, #tpu.memory_space<vmem>>, vector<32x128xf32>
    %cst_37 = arith.constant dense<0.000000e+00> : vector<8x128xf32>
    %180 = tpu.matmul %159, %178, %cst_37 {dimension_numbers = #tpu.dot_dimension_numbers<[1], [0], [0], [1], [0, 0, 1, 1], [], []>} : vector<8x32xf32>, vector<32x128xf32>, vector<8x128xf32> -> vector<8x128xf32>
    %cst_38 = arith.constant dense<0.000000e+00> : vector<8x128xf32>
    %181 = tpu.matmul %177, %179, %cst_38 {dimension_numbers = #tpu.dot_dimension_numbers<[1], [0], [0], [1], [0, 0, 1, 1], [], []>} : vector<8x32xf32>, vector<32x128xf32>, vector<8x128xf32> -> vector<8x128xf32>
    %182 = arith.addf %180, %181 : vector<8x128xf32>
    %c0_39 = arith.constant 0 : index
    %c384_40 = arith.constant 384 : index
    %183 = vector.load %arg4[%c0_39, %c384_40] : memref<1x512xf32, #tpu.memory_space<vmem>>, vector<1x128xf32>
    %184 = vector.broadcast %183 : vector<1x128xf32> to vector<8x128xf32>
    %185 = arith.addf %182, %184 : vector<8x128xf32>
    %c0_41 = arith.constant 0 : index
    %c0_42 = arith.constant 0 : index
    %186 = vector.load %arg5[%c0_41, %c0_42] : memref<8x128xf32, #tpu.memory_space<vmem>>, vector<8x128xf32>
    tpu.vector_store %arg5[%c0_41, %c0_42], %185 {strides = array<i32>} : memref<8x128xf32, #tpu.memory_space<vmem>>, vector<8x128xf32>,
    return
  }
  func.func @transform_0(%arg0: i32) -> (i32, i32, i32) {
    %c0_i32 = arith.constant 0 : i32
    %c0_i32_0 = arith.constant 0 : i32
    %c0_i32_1 = arith.constant 0 : i32
    return %arg0, %c0_i32, %c0_i32_0 : i32, i32, i32
  }
  func.func @transform_1(%arg0: i32) -> (i32, i32) {
    %c0_i32 = arith.constant 0 : i32
    %c0_i32_0 = arith.constant 0 : i32
    %c0_i32_1 = arith.constant 0 : i32
    return %c0_i32, %c0_i32_0 : i32, i32
  }
  func.func @transform_2(%arg0: i32) -> (i32, i32) {
    %c0_i32 = arith.constant 0 : i32
    %c0_i32_0 = arith.constant 0 : i32
    %c0_i32_1 = arith.constant 0 : i32
    return %c0_i32, %c0_i32_0 : i32, i32
  }
  func.func @transform_3(%arg0: i32) -> (i32, i32) {
    %c0_i32 = arith.constant 0 : i32
    %c0_i32_0 = arith.constant 0 : i32
    %c0_i32_1 = arith.constant 0 : i32
    return %c0_i32, %c0_i32_0 : i32, i32
  }
  func.func @transform_4(%arg0: i32) -> (i32, i32) {
    %c0_i32 = arith.constant 0 : i32
    %c0_i32_0 = arith.constant 0 : i32
    return %arg0, %c0_i32 : i32, i32
  }
}

</mosaic_0001>

<bundles_post_ra>
// kernel: _lambda_.1
= control target key start
LH: loop header
LB: loop body
LE: loop exit
PB: predicated region body
PF: predicated region fallthrough
CT: control target
= control target key end

     0   :  { %vm31_vm0 = vcmask 130048   ;;  %v949_v11 = vmov 0.0   ;;  %vm117_vm1 = vcmask 261120   ;;  %s950_s16 = smov 64   ;;  %s951_s17 = smov 32   ;;  %s1214_s1 = inlined_call_operand.vmem [shape: f32[16,32], index: 1, kind: input, shape index: {}]   ;;  %s1215_s0 = inlined_call_operand.vmem [shape: f32[1,64,16], index: 0, kind: input, shape index: {}]   ;;  %s1216_s2 = inlined_call_operand.vmem [shape: f32[32,640], index: 2, kind: input, shape index: {}]   ;;  %s1217_s3 = inlined_call_operand.vmem [shape: f32[1,512], index: 3, kind: input, shape index: {}]   ;;  %s1218_s4 = inlined_call_operand.vmem [shape: f32[8,128], index: 4, kind: output, shape index: {}]  }
   0x1   :  { %v26_v0 = vld [vmem:[%s1214_s1 + $0x8] sm:$0xff]  ;;  %v25_v1 = vld [vmem:[%s1214_s1] sm:$0xff]  ;;  %v24_v3 = vld [vmem:[%s1215_s0 + $0x38] sm:$0xff]  ;;  %s952_s12 = smov 96  }
   0x2   :  { %70 = vmatpush.msra.mxu0 %v26_v0  ;;  %v17_v2 = vld [vmem:[%s1215_s0] sm:$0xff]  ;;  %847 = vmatpush.msra.mxu2 %v26_v0  ;;  %v1001_v5 = vld [vmem:[%s1216_s2 + $0x58] sm:$0xff]  ;;  %v1007_v6 = vld [vmem:[%s1216_s2 + $0x30] sm:$0xff] }
   0x3   :  { %v993_v4 = vld [vmem:[%s1216_s2 + $0x80] sm:$0xff]  ;;  %v108_v7 = vld [vmem:[%s1216_s2 + $0x78] sm:$0xff]  ;;  %v1016_v8 = vld [vmem:[%s1216_s2 + $0x8] sm:$0xff] }
   0x4   :  { %71 = vmatpush.msra.mxu0 %v25_v1  ;;  %848 = vmatpush.msra.mxu2 %v25_v1  ;;  %v107_v9 = vld [vmem:[%s1216_s2 + $0x50] sm:$0xff]  ;;  %v106_v10 = vld [vmem:[%s1216_s2 + $0x28] sm:$0xff]  ;;  %v105_v12 = vld [vmem:[%s1216_s2] sm:$0xff] }
   0x5   :  { %812 = vmatmul.msk.f32.vlgmr.msra.gmra.mxu0 %vm31_vm0, %v17_v2  ;;  %819 = vmatmul.msk.f32.vlgmr.msra.gmra.mxu2 %vm31_vm0, %v24_v3  ;;  %v1043_v13 = vld [vmem:[%s1217_s3] ss:$0 sm:$0xff]  ;;  %v1059_v20 = vld [vmem:[%s1217_s3 + $0x1] ss:$0 sm:$0xff]  ;;  %v18_v41 = vld [vmem:[%s1215_s0 + $0x8] sm:$0xff] }
   0x6   :  { %198 = vmatpush.msrb.mxu2 %v993_v4  ;;  %154 = vmatpush.msra.mxu1 %v108_v7 }
   0x7   :  { %849 = vmatpush.msra.mxu3 %v108_v7 }
   0x8   :  { %199 = vmatpush.msrb.mxu2 %v1001_v5  ;;  %155 = vmatpush.msra.mxu1 %v107_v9 }
   0x9   :  { %850 = vmatpush.msra.mxu3 %v107_v9 }
   0xa   :  { %200 = vmatpush.msrb.mxu2 %v1007_v6  ;;  %156 = vmatpush.msra.mxu1 %v106_v10 }
   0xb   :  { %851 = vmatpush.msra.mxu3 %v106_v10 }
   0xc   :  { %201 = vmatpush.msrb.mxu2 %v1016_v8  ;;  %157 = vmatpush.msra.mxu1 %v105_v12 }
   0xd   :  { %202 = vmatmul.f32.vlgmr.msrb.gmra.mxu2 %v949_v11  ;;  %852 = vmatpush.msra.mxu3 %v105_v12 }
   0xe   :  { %324 = vmatpush.msra.mxu2 %v993_v4  ;;  %813 = vmatmul.msk.f32.gmra.mxu0 %vm31_vm0, %v18_v41 }
   0xf   :  { %261 = vmatpush.msrb.mxu3 %v993_v4 }
  0x10   :  { %325 = vmatpush.msra.mxu2 %v1001_v5 }
  0x11   :  { %262 = vmatpush.msrb.mxu3 %v1001_v5 }
  0x12   :  { %326 = vmatpush.msra.mxu2 %v1007_v6 }
  0x13   :  { %263 = vmatpush.msrb.mxu3 %v1007_v6 }
  0x14   :  { %327 = vmatpush.msra.mxu2 %v1016_v8 }
  0x15   :  { %264 = vmatpush.msrb.mxu3 %v1016_v8 }
  0x16   :  { %450 = vmatpush.msrb.mxu2 %v993_v4 }
  0x18   :  { %451 = vmatpush.msrb.mxu2 %v1001_v5 }
  0x1a   :  { %452 = vmatpush.msrb.mxu2 %v1007_v6 }
  0x1c   :  { %453 = vmatpush.msrb.mxu2 %v1016_v8 }
  0x82   :  { %v73_v14 = vpop.f32.mrf.mxu0 }
  0x83   :  { %v74_v15 = vadd.f32 %v1043_v13, %v73_v14  ;;  %v19_v14 = vld [vmem:[%s1215_s0 + $0x10] sm:$0xff] }
  0x84   :  { %814 = vmatmul.msk.f32.gmra.mxu0 %vm31_vm0, %v19_v14 }
  0x85   :  { %861 = vtanh.f32 %v74_v15 }
  0x88   :  { %v94_v16 = vpop.f32.mrf.mxu2 }
  0x89   :  { %v95_v17 = vadd.f32 %v1043_v13, %v94_v16 }
  0x8b   :  { %v862_v18 = vpop.eup %861  ;;  %863 = vtanh.f32 %v95_v17  ;;  %v76_v46 = vpop.f32.mrf.mxu0 }
  0x8c   :  { %820 = vmatmul.msk.f32.vlgmr.msra.gmra.mxu1 %vm117_vm1, %v862_v18  ;;  %v77_v47 = vadd.f32 %v1043_v13, %v76_v46 }
  0x90   :  { %v203_v22 = vpop.f32.mrf.mxu2 }
  0x91   :  { %v1048_v19 = vpop.eup %863 }
  0x92   :  { %827 = vmatmul.msk.f32.vlgmr.msra.gmra.mxu3 %vm117_vm1, %v1048_v19 }
  0x93   :  { %387 = vmatpush.msra.mxu3 %v993_v4 }
  0x95   :  { %388 = vmatpush.msra.mxu3 %v1001_v5 }
  0x97   :  { %389 = vmatpush.msra.mxu3 %v1007_v6 }
  0x99   :  { %390 = vmatpush.msra.mxu3 %v1016_v8 }
 0x109   :  { %v159_v21 = vpop.f32.mrf.mxu1 }
 0x10a   :  { %v160_v23 = vadd.f32 %v1059_v20, %v159_v21  ;;  %v79_v21 = vpop.f32.mrf.mxu0 }
 0x10c   :  { %v206_v24 = vadd.f32 %v203_v22, %v160_v23  ;;  %v80_v22 = vadd.f32 %v1043_v13, %v79_v21 }
 0x10e   :  { %865 = vtanh.f32 %v206_v24  ;;  %v828_v26 = vmul.f32 -1.442695, %v206_v24 }
 0x110   :  { %867 = vpow2.f32 %v828_v26 }
 0x114   :  { %v866_v25 = vpop.eup %865 }
 0x115   :  { %229 = vrot.lane.b32.xlu0 %v866_v25, %s950_s16  ;;  %v1077_v52 = vpop.f32.mrf.mxu3 }
 0x116   :  { %v868_v27 = vpop.eup %867 }
 0x117   :  { %v210_v28 = vadd.f32 1.0, %v868_v27 }
 0x119   :  { %869 = vrcp.f32 %v210_v28  ;;  %v222_v34 = vand.u32 2147483648, %v210_v28  ;;  %vm216_vm3 = vweird.f32 %v210_v28  ;;  %v220_v35 = vand.u32 2147483647, %v210_v28 }
 0x11b   :  { %v223_v37 = vor.u32 1.1754944e-38, %v222_v34  ;;  %vm221_vm5 = vcmp.eq.f32.partialorder %v220_v35, 8.507059e+37 }
 0x11f   :  { %v870_v29 = vpop.eup %869 }
 0x120   :  { %v212_v30 = vmul.f32 %v870_v29, %v210_v28  ;;  %vm217_vm2 = vweird.f32 %v870_v29 }
 0x121   :  { %vm218_vm4 = vmor %vm216_vm3, %vm217_vm2 }
 0x122   :  { %v213_v31 = vsub.f32 1.0, %v212_v30 }
 0x124   :  { %v214_v32 = vmul.f32 %v870_v29, %v213_v31 }
 0x126   :  { %v215_v33 = vadd.f32 %v870_v29, %v214_v32 }
 0x128   :  { %v219_v36 = vsel %vm218_vm4, %v870_v29, %v215_v33 }
 0x129   :  { %v224_v39 = vsel %vm221_vm5, %v223_v37, %v219_v36 }
 0x12a   :  { %v227_v42 = vmul.f32 0.0, %v224_v39 }
 0x187   :  { %v230_v38 = vpop.permute.xlu0 %229 }
 0x188   :  { %v232_v40 = vmul.f32 %v230_v38, %v224_v39 }
 0x18a   :  { %234 = vrot.lane.b32.xlu0 %v232_v40, %s951_s17 }
 0x1fc   :  { %v235_v43 = vpop.permute.xlu0 %234 }
 0x1fd   :  { %v237_v44 = vadd.f32 %v235_v43, %v227_v42 }
 0x1ff   :  { %871 = vtanh.f32 %v237_v44 }
 0x200   :  { %873 = vtanh.f32 %v77_v47  ;;  %v20_v47 = vld [vmem:[%s1215_s0 + $0x18] sm:$0xff] }
 0x201   :  { %815 = vmatmul.msk.f32.gmra.mxu0 %vm31_vm0, %v20_v47 }
 0x205   :  { %v872_v45 = vpop.eup %871 }
 0x206   :  { %240 = vrot.lane.b32.xlu1 %v872_v45, %s950_s16  ;;  %v874_v48 = vpop.eup %873 }
 0x207   :  { %821 = vmatmul.msk.f32.gmra.mxu1 %vm117_vm1, %v874_v48 }
 0x278   :  { %v241_v49 = vpop.permute.xlu1 %240 }
 0x279   :  { %v243_v50 = vmul.f32 %v241_v49, %v224_v39 }
 0x27b   :  { %245 = vrot.lane.b32.xlu1 %v243_v50, %s951_s17 }
 0x284   :  { %v162_v53 = vpop.f32.mrf.mxu1 }
 0x285   :  { %v163_v54 = vadd.f32 %v1059_v20, %v162_v53  ;;  %v82_v53 = vpop.f32.mrf.mxu0 }
 0x2ed   :  { %v246_v51 = vpop.permute.xlu1 %245 }
 0x2ee   :  { %829 = vmatmul.msk.f32.vlgmr.msrb.gmra.mxu3 %vm117_vm1, %v246_v51 }
 0x2ef   :  { %513 = vmatpush.msrb.mxu3 %v993_v4 }
 0x2f1   :  { %514 = vmatpush.msrb.mxu3 %v1001_v5 }
 0x2f3   :  { %515 = vmatpush.msrb.mxu3 %v1007_v6 }
 0x2f5   :  { %516 = vmatpush.msrb.mxu3 %v1016_v8 }
 0x371   :  { %v266_v55 = vpop.f32.mrf.mxu3 }
 0x372   :  { %v269_v56 = vadd.f32 %v266_v55, %v163_v54  ;;  %v83_v54 = vadd.f32 %v1043_v13, %v82_v53 }
 0x374   :  { %875 = vtanh.f32 %v269_v56  ;;  %v830_v58 = vmul.f32 -1.442695, %v269_v56 }
 0x376   :  { %877 = vpow2.f32 %v830_v58 }
 0x37a   :  { %v876_v57 = vpop.eup %875 }
 0x37b   :  { %292 = vrot.lane.b32.xlu2 %v876_v57, %s950_s16 }
 0x37c   :  { %v878_v59 = vpop.eup %877 }
 0x37d   :  { %v273_v60 = vadd.f32 1.0, %v878_v59 }
 0x37f   :  { %879 = vrcp.f32 %v273_v60  ;;  %v285_v2 = vand.u32 2147483648, %v273_v60  ;;  %vm279_vm7 = vweird.f32 %v273_v60  ;;  %v283_v3 = vand.u32 2147483647, %v273_v60 }
 0x381   :  { %v286_v9 = vor.u32 1.1754944e-38, %v285_v2  ;;  %vm284_vm9 = vcmp.eq.f32.partialorder %v283_v3, 8.507059e+37 }
 0x385   :  { %v880_v61 = vpop.eup %879 }
 0x386   :  { %v275_v62 = vmul.f32 %v880_v61, %v273_v60  ;;  %vm280_vm6 = vweird.f32 %v880_v61 }
 0x387   :  { %vm281_vm8 = vmor %vm279_vm7, %vm280_vm6 }
 0x388   :  { %v276_v63 = vsub.f32 1.0, %v275_v62 }
 0x38a   :  { %v277_v0 = vmul.f32 %v880_v61, %v276_v63 }
 0x38c   :  { %v278_v1 = vadd.f32 %v880_v61, %v277_v0 }
 0x38e   :  { %v282_v7 = vsel %vm281_vm8, %v880_v61, %v278_v1 }
 0x38f   :  { %v287_v11 = vsel %vm284_vm9, %v286_v9, %v282_v7 }
 0x390   :  { %v290_v15 = vmul.f32 %v287_v11, %v237_v44 }
 0x3d5   :  { %v293_v10 = vpop.permute.xlu2 %292 }
 0x3d6   :  { %v295_v12 = vmul.f32 %v293_v10, %v287_v11 }
 0x3d8   :  { %297 = vrot.lane.b32.xlu2 %v295_v12, %s951_s17 }
 0x432   :  { %v298_v16 = vpop.permute.xlu2 %297 }
 0x433   :  { %v300_v17 = vadd.f32 %v298_v16, %v290_v15  ;;  %v21_v16 = vld [vmem:[%s1215_s0 + $0x20] sm:$0xff] }
 0x434   :  { %816 = vmatmul.msk.f32.gmra.mxu0 %vm31_vm0, %v21_v16 }
 0x435   :  { %881 = vtanh.f32 %v300_v17 }
 0x436   :  { %883 = vtanh.f32 %v80_v22 }
 0x43b   :  { %v882_v18 = vpop.eup %881 }
 0x43c   :  { %303 = vrot.lane.b32.xlu0 %v882_v18, %s950_s16  ;;  %v884_v23 = vpop.eup %883 }
 0x43d   :  { %822 = vmatmul.msk.f32.gmra.mxu1 %vm117_vm1, %v884_v23 }
 0x4ae   :  { %v304_v24 = vpop.permute.xlu0 %303 }
 0x4af   :  { %v306_v25 = vmul.f32 %v304_v24, %v287_v11 }
 0x4b1   :  { %308 = vrot.lane.b32.xlu1 %v306_v25, %s951_s17  ;;  %v85_v25 = vpop.f32.mrf.mxu0 }
 0x4ba   :  { %v165_v27 = vpop.f32.mrf.mxu1 }
 0x4bb   :  { %v166_v28 = vadd.f32 %v1059_v20, %v165_v27 }
 0x523   :  { %v309_v26 = vpop.permute.xlu1 %308 }
 0x524   :  { %831 = vmatmul.msk.f32.vlgmr.msra.gmra.mxu2 %vm117_vm1, %v309_v26  ;;  %v86_v26 = vadd.f32 %v1043_v13, %v85_v25 }
 0x525   :  { %576 = vmatpush.msra.mxu2 %v993_v4 }
 0x527   :  { %577 = vmatpush.msra.mxu2 %v1001_v5 }
 0x529   :  { %578 = vmatpush.msra.mxu2 %v1007_v6 }
 0x52b   :  { %579 = vmatpush.msra.mxu2 %v1016_v8 }
 0x5a7   :  { %v329_v29 = vpop.f32.mrf.mxu2 }
 0x5a8   :  { %v332_v30 = vadd.f32 %v329_v29, %v166_v28 }
 0x5aa   :  { %885 = vtanh.f32 %v332_v30  ;;  %v832_v32 = vmul.f32 -1.442695, %v332_v30 }
 0x5ac   :  { %887 = vpow2.f32 %v832_v32 }
 0x5b0   :  { %v886_v31 = vpop.eup %885 }
 0x5b1   :  { %355 = vrot.lane.b32.xlu2 %v886_v31, %s950_s16 }
 0x5b2   :  { %v888_v33 = vpop.eup %887 }
 0x5b3   :  { %v336_v34 = vadd.f32 1.0, %v888_v33 }
 0x5b5   :  { %889 = vrcp.f32 %v336_v34  ;;  %v348_v40 = vand.u32 2147483648, %v336_v34  ;;  %vm342_vm11 = vweird.f32 %v336_v34  ;;  %v346_v41 = vand.u32 2147483647, %v336_v34 }
 0x5b7   :  { %v349_v43 = vor.u32 1.1754944e-38, %v348_v40  ;;  %vm347_vm13 = vcmp.eq.f32.partialorder %v346_v41, 8.507059e+37 }
 0x5bb   :  { %v890_v35 = vpop.eup %889 }
 0x5bc   :  { %v338_v36 = vmul.f32 %v890_v35, %v336_v34  ;;  %vm343_vm10 = vweird.f32 %v890_v35 }
 0x5bd   :  { %vm344_vm12 = vmor %vm342_vm11, %vm343_vm10 }
 0x5be   :  { %v339_v37 = vsub.f32 1.0, %v338_v36 }
 0x5c0   :  { %v340_v38 = vmul.f32 %v890_v35, %v339_v37 }
 0x5c2   :  { %v341_v39 = vadd.f32 %v890_v35, %v340_v38 }
 0x5c4   :  { %v345_v42 = vsel %vm344_vm12, %v890_v35, %v341_v39 }
 0x5c5   :  { %v350_v45 = vsel %vm347_vm13, %v349_v43, %v345_v42 }
 0x5c6   :  { %v353_v48 = vmul.f32 %v350_v45, %v300_v17 }
 0x60b   :  { %v356_v44 = vpop.permute.xlu2 %355 }
 0x60c   :  { %v358_v46 = vmul.f32 %v356_v44, %v350_v45 }
 0x60e   :  { %360 = vrot.lane.b32.xlu0 %v358_v46, %s951_s17 }
 0x680   :  { %v361_v49 = vpop.permute.xlu0 %360 }
 0x681   :  { %v363_v50 = vadd.f32 %v361_v49, %v353_v48  ;;  %v22_v49 = vld [vmem:[%s1215_s0 + $0x28] sm:$0xff] }
 0x682   :  { %817 = vmatmul.msk.f32.gmra.mxu0 %vm31_vm0, %v22_v49 }
 0x683   :  { %891 = vtanh.f32 %v363_v50 }
 0x684   :  { %893 = vtanh.f32 %v83_v54 }
 0x689   :  { %v892_v51 = vpop.eup %891 }
 0x68a   :  { %366 = vrot.lane.b32.xlu1 %v892_v51, %s950_s16  ;;  %v894_v55 = vpop.eup %893 }
 0x68b   :  { %823 = vmatmul.msk.f32.gmra.mxu1 %vm117_vm1, %v894_v55 }
 0x6fc   :  { %v367_v56 = vpop.permute.xlu1 %366 }
 0x6fd   :  { %v369_v57 = vmul.f32 %v367_v56, %v350_v45 }
 0x6ff   :  { %371 = vrot.lane.b32.xlu2 %v369_v57, %s951_s17  ;;  %v88_v55 = vpop.f32.mrf.mxu0 }
 0x700   :  { %v89_v56 = vadd.f32 %v1043_v13, %v88_v55 }
 0x708   :  { %v168_v59 = vpop.f32.mrf.mxu1 }
 0x709   :  { %v169_v60 = vadd.f32 %v1059_v20, %v168_v59 }
 0x759   :  { %v372_v58 = vpop.permute.xlu2 %371 }
 0x75a   :  { %833 = vmatmul.msk.f32.vlgmr.msra.gmra.mxu3 %vm117_vm1, %v372_v58 }
 0x75b   :  { %639 = vmatpush.msra.mxu3 %v993_v4 }
 0x75d   :  { %640 = vmatpush.msra.mxu3 %v1001_v5 }
 0x75f   :  { %641 = vmatpush.msra.mxu3 %v1007_v6 }
 0x761   :  { %642 = vmatpush.msra.mxu3 %v1016_v8 }
 0x7dd   :  { %v392_v61 = vpop.f32.mrf.mxu3 }
 0x7de   :  { %v395_v62 = vadd.f32 %v392_v61, %v169_v60 }
 0x7e0   :  { %895 = vtanh.f32 %v395_v62  ;;  %v834_v0 = vmul.f32 -1.442695, %v395_v62 }
 0x7e2   :  { %897 = vpow2.f32 %v834_v0 }
 0x7e6   :  { %v896_v63 = vpop.eup %895 }
 0x7e7   :  { %418 = vrot.lane.b32.xlu0 %v896_v63, %s950_s16 }
 0x7e8   :  { %v898_v1 = vpop.eup %897 }
 0x7e9   :  { %v399_v2 = vadd.f32 1.0, %v898_v1 }
 0x7eb   :  { %899 = vrcp.f32 %v399_v2  ;;  %v411_v8 = vand.u32 2147483648, %v399_v2  ;;  %vm405_vm15 = vweird.f32 %v399_v2  ;;  %v409_v9 = vand.u32 2147483647, %v399_v2 }
 0x7ed   :  { %v412_v11 = vor.u32 1.1754944e-38, %v411_v8  ;;  %vm410_vm3 = vcmp.eq.f32.partialorder %v409_v9, 8.507059e+37 }
 0x7f1   :  { %v900_v4 = vpop.eup %899 }
 0x7f2   :  { %v401_v5 = vmul.f32 %v900_v4, %v399_v2  ;;  %vm406_vm14 = vweird.f32 %v900_v4 }
 0x7f3   :  { %vm407_vm2 = vmor %vm405_vm15, %vm406_vm14 }
 0x7f4   :  { %v402_v3 = vsub.f32 1.0, %v401_v5 }
 0x7f6   :  { %v403_v6 = vmul.f32 %v900_v4, %v402_v3 }
 0x7f8   :  { %v404_v7 = vadd.f32 %v900_v4, %v403_v6 }
 0x7fa   :  { %v408_v10 = vsel %vm407_vm2, %v900_v4, %v404_v7 }
 0x7fb   :  { %v413_v14 = vsel %vm410_vm3, %v412_v11, %v408_v10 }
 0x7fc   :  { %v416_v17 = vmul.f32 %v413_v14, %v363_v50 }
 0x859   :  { %v419_v12 = vpop.permute.xlu0 %418 }
 0x85a   :  { %v421_v15 = vmul.f32 %v419_v12, %v413_v14 }
 0x85c   :  { %423 = vrot.lane.b32.xlu1 %v421_v15, %s951_s17 }
 0x8ce   :  { %v424_v18 = vpop.permute.xlu1 %423 }
 0x8cf   :  { %v426_v21 = vadd.f32 %v424_v18, %v416_v17  ;;  %v23_v18 = vld [vmem:[%s1215_s0 + $0x30] sm:$0xff] }
 0x8d0   :  { %818 = vmatmul.msk.f32.gmra.mxu0 %vm31_vm0, %v23_v18 }
 0x8d1   :  { %901 = vtanh.f32 %v426_v21 }
 0x8d2   :  { %903 = vtanh.f32 %v86_v26 }
 0x8d7   :  { %v902_v22 = vpop.eup %901 }
 0x8d8   :  { %429 = vrot.lane.b32.xlu2 %v902_v22, %s950_s16  ;;  %v904_v27 = vpop.eup %903 }
 0x8d9   :  { %824 = vmatmul.msk.f32.gmra.mxu1 %vm117_vm1, %v904_v27 }
 0x932   :  { %v430_v23 = vpop.permute.xlu2 %429 }
 0x933   :  { %v432_v24 = vmul.f32 %v430_v23, %v413_v14 }
 0x935   :  { %434 = vrot.lane.b32.xlu0 %v432_v24, %s951_s17 }
 0x94d   :  { %v91_v25 = vpop.f32.mrf.mxu0 }
 0x94e   :  { %v92_v26 = vadd.f32 %v1043_v13, %v91_v25  ;;  %v686_v13 = vld [vmem:[%s1216_s2 + $0x38] sm:$0xff] }
 0x956   :  { %v171_v29 = vpop.f32.mrf.mxu1 }
 0x957   :  { %v172_v30 = vadd.f32 %v1059_v20, %v171_v29 }
 0x9a7   :  { %v435_v28 = vpop.permute.xlu0 %434 }
 0x9a8   :  { %835 = vmatmul.msk.f32.vlgmr.msrb.gmra.mxu2 %vm117_vm1, %v435_v28 }
 0xa2b   :  { %v455_v31 = vpop.f32.mrf.mxu2 }
 0xa2c   :  { %v458_v32 = vadd.f32 %v455_v31, %v172_v30  ;;  %v688_v30 = vld [vmem:[%s1216_s2 + $0x88] sm:$0xff]  ;;  %v687_v31 = vld [vmem:[%s1216_s2 + $0x60] sm:$0xff] }
 0xa2d   :  { %705 = vmatpush.msrb.mxu2 %v688_v30 }
 0xa2e   :  { %905 = vtanh.f32 %v458_v32  ;;  %v836_v34 = vmul.f32 -1.442695, %v458_v32  ;;  %v685_v32 = vld [vmem:[%s1216_s2 + $0x10] sm:$0xff] }
 0xa2f   :  { %706 = vmatpush.msrb.mxu2 %v687_v31 }
 0xa30   :  { %907 = vpow2.f32 %v836_v34 }
 0xa31   :  { %707 = vmatpush.msrb.mxu2 %v686_v13 }
 0xa33   :  { %708 = vmatpush.msrb.mxu2 %v685_v32 }
 0xa34   :  { %v906_v33 = vpop.eup %905 }
 0xa35   :  { %481 = vrot.lane.b32.xlu1 %v906_v33, %s950_s16 }
 0xa36   :  { %v908_v35 = vpop.eup %907 }
 0xa37   :  { %v462_v36 = vadd.f32 1.0, %v908_v35 }
 0xa39   :  { %909 = vrcp.f32 %v462_v36  ;;  %v474_v42 = vand.u32 2147483648, %v462_v36  ;;  %vm468_vm5 = vweird.f32 %v462_v36  ;;  %v472_v43 = vand.u32 2147483647, %v462_v36 }
 0xa3b   :  { %v475_v45 = vor.u32 1.1754944e-38, %v474_v42  ;;  %vm473_vm7 = vcmp.eq.f32.partialorder %v472_v43, 8.507059e+37 }
 0xa3f   :  { %v910_v37 = vpop.eup %909 }
 0xa40   :  { %v464_v38 = vmul.f32 %v910_v37, %v462_v36  ;;  %vm469_vm4 = vweird.f32 %v910_v37 }
 0xa41   :  { %vm470_vm6 = vmor %vm468_vm5, %vm469_vm4 }
 0xa42   :  { %v465_v39 = vsub.f32 1.0, %v464_v38 }
 0xa44   :  { %v466_v40 = vmul.f32 %v910_v37, %v465_v39 }
 0xa46   :  { %v467_v41 = vadd.f32 %v910_v37, %v466_v40 }
 0xa48   :  { %v471_v44 = vsel %vm470_vm6, %v910_v37, %v467_v41 }
 0xa49   :  { %v476_v47 = vsel %vm473_vm7, %v475_v45, %v471_v44 }
 0xa4a   :  { %v479_v50 = vmul.f32 %v476_v47, %v426_v21 }
 0xaa7   :  { %v482_v46 = vpop.permute.xlu1 %481 }
 0xaa8   :  { %v484_v48 = vmul.f32 %v482_v46, %v476_v47 }
 0xaaa   :  { %486 = vrot.lane.b32.xlu2 %v484_v48, %s951_s17 }
 0xb04   :  { %v487_v51 = vpop.permute.xlu2 %486 }
 0xb05   :  { %v489_v53 = vadd.f32 %v487_v51, %v479_v50 }
 0xb07   :  { %911 = vtanh.f32 %v489_v53 }
 0xb08   :  { %913 = vtanh.f32 %v89_v56 }
 0xb0d   :  { %v912_v54 = vpop.eup %911 }
 0xb0e   :  { %492 = vrot.lane.b32.xlu0 %v912_v54, %s950_s16  ;;  %v914_v57 = vpop.eup %913 }
 0xb0f   :  { %825 = vmatmul.msk.f32.gmra.mxu1 %vm117_vm1, %v914_v57 }
 0xb80   :  { %v493_v58 = vpop.permute.xlu0 %492 }
 0xb81   :  { %v495_v59 = vmul.f32 %v493_v58, %v476_v47  ;;  %v859_v58 = vld [vmem:[%s1217_s3 + $0x2] ss:$0 sm:$0xff] }
 0xb83   :  { %497 = vrot.lane.b32.xlu1 %v495_v59, %s951_s17 }
 0xb8c   :  { %v174_v61 = vpop.f32.mrf.mxu1 }
 0xb8d   :  { %v175_v62 = vadd.f32 %v1059_v20, %v174_v61 }
 0xbf5   :  { %v498_v60 = vpop.permute.xlu1 %497 }
 0xbf6   :  { %837 = vmatmul.msk.f32.vlgmr.msrb.gmra.mxu3 %vm117_vm1, %v498_v60 }
 0xc79   :  { %v518_v63 = vpop.f32.mrf.mxu3 }
 0xc7a   :  { %v521_v0 = vadd.f32 %v518_v63, %v175_v62 }
 0xc7c   :  { %915 = vtanh.f32 %v521_v0  ;;  %v838_v2 = vmul.f32 -1.442695, %v521_v0 }
 0xc7e   :  { %917 = vpow2.f32 %v838_v2 }
 0xc82   :  { %v916_v1 = vpop.eup %915 }
 0xc83   :  { %544 = vrot.lane.b32.xlu2 %v916_v1, %s950_s16  ;;  %v181_v1 = vadd.f32 %v1059_v20, %v1077_v52 }
 0xc84   :  { %v918_v4 = vpop.eup %917 }
 0xc85   :  { %v525_v5 = vadd.f32 1.0, %v918_v4 }
 0xc87   :  { %919 = vrcp.f32 %v525_v5  ;;  %v537_v10 = vand.u32 2147483648, %v525_v5  ;;  %vm531_vm9 = vweird.f32 %v525_v5  ;;  %v535_v11 = vand.u32 2147483647, %v525_v5 }
 0xc89   :  { %v538_v14 = vor.u32 1.1754944e-38, %v537_v10  ;;  %vm536_vm11 = vcmp.eq.f32.partialorder %v535_v11, 8.507059e+37 }
 0xc8d   :  { %v920_v3 = vpop.eup %919 }
 0xc8e   :  { %v527_v6 = vmul.f32 %v920_v3, %v525_v5  ;;  %vm532_vm8 = vweird.f32 %v920_v3 }
 0xc8f   :  { %vm533_vm10 = vmor %vm531_vm9, %vm532_vm8 }
 0xc90   :  { %v528_v7 = vsub.f32 1.0, %v527_v6 }
 0xc92   :  { %v529_v8 = vmul.f32 %v920_v3, %v528_v7 }
 0xc94   :  { %v530_v9 = vadd.f32 %v920_v3, %v529_v8 }
 0xc96   :  { %v534_v12 = vsel %vm533_vm10, %v920_v3, %v530_v9 }
 0xc97   :  { %v539_v16 = vsel %vm536_vm11, %v538_v14, %v534_v12 }
 0xc98   :  { %v542_v21 = vmul.f32 %v539_v16, %v489_v53 }
 0xcdd   :  { %v545_v15 = vpop.permute.xlu2 %544 }
 0xcde   :  { %v547_v17 = vmul.f32 %v545_v15, %v539_v16 }
 0xce0   :  { %549 = vrot.lane.b32.xlu0 %v547_v17, %s951_s17 }
 0xd52   :  { %v550_v22 = vpop.permute.xlu0 %549 }
 0xd53   :  { %v552_v23 = vadd.f32 %v550_v22, %v542_v21 }
 0xd55   :  { %921 = vtanh.f32 %v552_v23 }
 0xd56   :  { %923 = vtanh.f32 %v92_v26 }
 0xd5b   :  { %v922_v24 = vpop.eup %921 }
 0xd5c   :  { %555 = vrot.lane.b32.xlu1 %v922_v24, %s950_s16  ;;  %v924_v27 = vpop.eup %923 }
 0xd5d   :  { %826 = vmatmul.msk.f32.gmra.mxu1 %vm117_vm1, %v924_v27 }
 0xdce   :  { %v556_v28 = vpop.permute.xlu1 %555 }
 0xdcf   :  { %v558_v29 = vmul.f32 %v556_v28, %v539_v16 }
 0xdd1   :  { %560 = vrot.lane.b32.xlu2 %v558_v29, %s951_s17 }
 0xdda   :  { %v177_v34 = vpop.f32.mrf.mxu1 }
 0xddb   :  { %v178_v35 = vadd.f32 %v1059_v20, %v177_v34 }
 0xe2b   :  { %v561_v33 = vpop.permute.xlu2 %560 }
 0xe2c   :  { %839 = vmatmul.msk.f32.vlgmr.msra.gmra.mxu2 %vm117_vm1, %v561_v33 }
 0xe34   :  { %843 = vmatmul.msk.f32.vlgmr.msrb.gmra.mxu2 %vm117_vm1, %v1048_v19 }
 0xeaf   :  { %v581_v36 = vpop.f32.mrf.mxu2 }
 0xeb0   :  { %v584_v37 = vadd.f32 %v581_v36, %v178_v35  ;;  %v751_v36 = vld [vmem:[%s1216_s2 + $0x98] sm:$0xff] }
 0xeb1   :  { %769 = vmatpush.msrb.mxu3 %v751_v36 }
 0xeb2   :  { %925 = vtanh.f32 %v584_v37  ;;  %v840_v39 = vmul.f32 -1.442695, %v584_v37  ;;  %v750_v37 = vld [vmem:[%s1216_s2 + $0x70] sm:$0xff] }
 0xeb3   :  { %770 = vmatpush.msrb.mxu3 %v750_v37 }
 0xeb4   :  { %927 = vpow2.f32 %v840_v39 }
 0xeb7   :  { %v710_v59 = vpop.f32.mrf.mxu2 }
 0xeb8   :  { %v926_v38 = vpop.eup %925  ;;  %v711_v60 = vadd.f32 %v859_v58, %v710_v59 }
 0xeb9   :  { %607 = vrot.lane.b32.xlu0 %v926_v38, %s950_s16  ;;  %v749_v38 = vld [vmem:[%s1216_s2 + $0x48] sm:$0xff] }
 0xeba   :  { %v928_v40 = vpop.eup %927  ;;  %v844_v3 = vmul.f32 -1.442695, %v711_v60  ;;  %771 = vmatpush.msrb.mxu3 %v749_v38 }
 0xebb   :  { %v588_v41 = vadd.f32 1.0, %v928_v40 }
 0xebd   :  { %929 = vrcp.f32 %v588_v41  ;;  %v600_v19 = vand.u32 2147483648, %v588_v41  ;;  %vm594_vm12 = vweird.f32 %v588_v41  ;;  %v598_v47 = vand.u32 2147483647, %v588_v41 }
 0xebf   :  { %v601_v49 = vor.u32 1.1754944e-38, %v600_v19  ;;  %vm599_vm14 = vcmp.eq.f32.partialorder %v598_v47, 8.507059e+37  ;;  %v746_v19 = vld [vmem:[%s1216_s2 + $0x68] sm:$0xff]  ;;  %v745_v47 = vld [vmem:[%s1216_s2 + $0x40] sm:$0xff] }
 0xec3   :  { %v930_v42 = vpop.eup %929 }
 0xec4   :  { %v590_v43 = vmul.f32 %v930_v42, %v588_v41  ;;  %vm595_vm0 = vweird.f32 %v930_v42 }
 0xec5   :  { %vm596_vm13 = vmor %vm594_vm12, %vm595_vm0 }
 0xec6   :  { %v591_v44 = vsub.f32 1.0, %v590_v43 }
 0xec8   :  { %v592_v45 = vmul.f32 %v930_v42, %v591_v44 }
 0xeca   :  { %v593_v46 = vadd.f32 %v930_v42, %v592_v45  ;;  %v748_v45 = vld [vmem:[%s1216_s2 + $0x20] sm:$0xff] }
 0xecb   :  { %772 = vmatpush.msrb.mxu3 %v748_v45 }
 0xecc   :  { %v597_v48 = vsel %vm596_vm13, %v930_v42, %v593_v46  ;;  %v747_v46 = vld [vmem:[%s1216_s2 + $0x90] sm:$0xff] }
 0xecd   :  { %v602_v51 = vsel %vm599_vm14, %v601_v49, %v597_v48  ;;  %794 = vmatpush.msra.mxu2 %v747_v46  ;;  %v744_v48 = vld [vmem:[%s1216_s2 + $0x18] sm:$0xff] }
 0xece   :  { %v605_v54 = vmul.f32 %v602_v51, %v552_v23 }
 0xecf   :  { %795 = vmatpush.msra.mxu2 %v746_v19 }
 0xed1   :  { %796 = vmatpush.msra.mxu2 %v745_v47 }
 0xed3   :  { %797 = vmatpush.msra.mxu2 %v744_v48 }
 0xf2b   :  { %v608_v50 = vpop.permute.xlu0 %607 }
 0xf2c   :  { %v610_v53 = vmul.f32 %v608_v50, %v602_v51 }
 0xf2e   :  { %612 = vrot.lane.b32.xlu1 %v610_v53, %s951_s17 }
 0xfa0   :  { %v613_v55 = vpop.permute.xlu1 %612 }
 0xfa1   :  { %v1164_v56 = vadd.f32 %v613_v55, %v605_v54  ;;  %v860_v54 = vld [vmem:[%s1217_s3 + $0x3] ss:$0 sm:$0xff] }
 0xfa3   :  { %931 = vtanh.f32 %v1164_v56 }
 0xfa4   :  { %933 = vtanh.f32 %v711_v60 }
 0xfa9   :  { %v932_v57 = vpop.eup %931 }
 0xfaa   :  { %618 = vrot.lane.b32.xlu2 %v932_v57, %s950_s16  ;;  %v934_v63 = vpop.eup %933 }
0x1004   :  { %v619_v61 = vpop.permute.xlu2 %618 }
0x1005   :  { %v621_v62 = vmul.f32 %v619_v61, %v602_v51 }
0x1007   :  { %623 = vrot.lane.b32.xlu0 %v621_v62, %s951_s17 }
0x100f   :  { %734 = vrot.lane.b32.xlu0 %v934_v63, %s950_s16 }
0x1079   :  { %v624_v0 = vpop.permute.xlu0 %623 }
0x107a   :  { %841 = vmatmul.msk.f32.vlgmr.msra.gmra.mxu3 %vm117_vm1, %v624_v0 }
0x1081   :  { %v735_v28 = vpop.permute.xlu0 %734 }
0x10fd   :  { %v644_v2 = vpop.f32.mrf.mxu3 }
0x10fe   :  { %v647_v4 = vadd.f32 %v644_v2, %v181_v1 }
0x1100   :  { %935 = vtanh.f32 %v647_v4  ;;  %v842_v6 = vmul.f32 -1.442695, %v647_v4 }
0x1101   :  { %937 = vpow2.f32 %v844_v3 }
0x1102   :  { %939 = vpow2.f32 %v842_v6 }
0x1106   :  { %v936_v5 = vpop.eup %935 }
0x1107   :  { %670 = vrot.lane.b32.xlu1 %v936_v5, %s950_s16  ;;  %v938_v7 = vpop.eup %937 }
0x1108   :  { %v940_v8 = vpop.eup %939  ;;  %v716_v9 = vadd.f32 1.0, %v938_v7 }
0x1109   :  { %v651_v10 = vadd.f32 1.0, %v940_v8 }
0x110a   :  { %941 = vrcp.f32 %v716_v9  ;;  %v728_v21 = vand.u32 2147483648, %v716_v9  ;;  %vm722_vm3 = vweird.f32 %v716_v9  ;;  %v726_v23 = vand.u32 2147483647, %v716_v9 }
0x110b   :  { %943 = vrcp.f32 %v651_v10  ;;  %v663_v24 = vand.u32 2147483648, %v651_v10  ;;  %vm657_vm5 = vweird.f32 %v651_v10  ;;  %v661_v25 = vand.u32 2147483647, %v651_v10 }
0x110c   :  { %v729_v27 = vor.u32 1.1754944e-38, %v728_v21  ;;  %vm727_vm7 = vcmp.eq.f32.partialorder %v726_v23, 8.507059e+37 }
0x110d   :  { %v664_v30 = vor.u32 1.1754944e-38, %v663_v24  ;;  %vm662_vm8 = vcmp.eq.f32.partialorder %v661_v25, 8.507059e+37 }
0x1110   :  { %v942_v11 = vpop.eup %941 }
0x1111   :  { %v944_v12 = vpop.eup %943  ;;  %v718_v14 = vmul.f32 %v942_v11, %v716_v9  ;;  %vm723_vm15 = vweird.f32 %v942_v11 }
0x1112   :  { %v653_v20 = vmul.f32 %v944_v12, %v651_v10  ;;  %vm658_vm2 = vweird.f32 %v944_v12  ;;  %vm724_vm4 = vmor %vm722_vm3, %vm723_vm15 }
0x1113   :  { %v719_v52 = vsub.f32 1.0, %v718_v14  ;;  %vm659_vm6 = vmor %vm657_vm5, %vm658_vm2 }
0x1114   :  { %v654_v15 = vsub.f32 1.0, %v653_v20 }
0x1115   :  { %v720_v16 = vmul.f32 %v942_v11, %v719_v52 }
0x1116   :  { %v655_v17 = vmul.f32 %v944_v12, %v654_v15 }
0x1117   :  { %v721_v18 = vadd.f32 %v942_v11, %v720_v16 }
0x1118   :  { %v656_v22 = vadd.f32 %v944_v12, %v655_v17 }
0x1119   :  { %v725_v26 = vsel %vm724_vm4, %v942_v11, %v721_v18 }
0x111a   :  { %v660_v29 = vsel %vm659_vm6, %v944_v12, %v656_v22  ;;  %v730_v31 = vsel %vm727_vm7, %v729_v27, %v725_v26 }
0x111b   :  { %v737_v13 = vmul.f32 %v735_v28, %v730_v31  ;;  %v665_v33 = vsel %vm662_vm8, %v664_v30, %v660_v29 }
0x111c   :  { %v668_v39 = vmul.f32 %v665_v33, %v1164_v56 }
0x111d   :  { %945 = vtanh.f32 %v737_v13 }
0x1123   :  { %v946_v35 = vpop.eup %945 }
0x1179   :  { %v671_v32 = vpop.permute.xlu1 %670 }
0x117a   :  { %v673_v34 = vmul.f32 %v671_v32, %v665_v33 }
0x117c   :  { %675 = vrot.lane.b32.xlu2 %v673_v34, %s951_s17 }
0x1184   :  { %740 = vrot.lane.b32.xlu2 %v946_v35, %s952_s12 }
0x11d6   :  { %v676_v40 = vpop.permute.xlu2 %675 }
0x11d7   :  { %v678_v41 = vadd.f32 %v676_v40, %v668_v39 }
0x11d9   :  { %947 = vtanh.f32 %v678_v41 }
0x11de   :  { %v741_v42 = vpop.permute.xlu2 %740 }
0x11df   :  { %v948_v43 = vpop.eup %947  ;;  %v743_v44 = vmul.f32 %v741_v42, %v730_v31 }
0x11e0   :  { %681 = vrot.lane.b32.xlu1 %v948_v43, %s950_s16 }
0x11e1   :  { %753 = vrot.lane.b32.xlu0 %v743_v44, %s951_s17 }
0x1252   :  { %v682_v49 = vpop.permute.xlu1 %681 }
0x1253   :  { %v684_v50 = vmul.f32 %v682_v49, %v665_v33  ;;  %v754_v51 = vpop.permute.xlu0 %753 }
0x1254   :  { %845 = vmatmul.msk.f32.vlgmr.msrb.gmra.mxu3 %vm117_vm1, %v754_v51 }
0x1255   :  { %778 = vrot.lane.b32.xlu1 %v684_v50, %s951_s17 }
0x12c7   :  { %v779_v53 = vpop.permute.xlu1 %778 }
0x12c8   :  { %846 = vmatmul.msk.f32.vlgmr.msra.gmra.mxu2 %vm117_vm1, %v779_v53 }
0x12d7   :  { %v774_v55 = vpop.f32.mrf.mxu3 }
0x134b   :  { %v799_v56 = vpop.f32.mrf.mxu2 }
0x134c   :  { %v800_v57 = vadd.f32 %v799_v56, %v774_v55 }
0x134e   :  { %v806_v58 = vadd.f32 %v860_v54, %v800_v57 }
0x1350   :  { %807 = vst [vmem:[%s1218_s4] sm:$0xff] %v806_v58 }

</bundles_post_ra>
